<compile_context>
chip_gen: v5e
topology: v5e:2x2
jax: 0.10.0
libtpu: 0.0.40
codegen_flags: <defaults>
</compile_context>

<pallas_src>
import functools

import jax
import jax.numpy as jnp
from jax.experimental import pallas as pl
from jax.experimental.pallas import tpu as pltpu


def _layernorm_kernel(x_ref, alpha_ref, bias_ref, o_ref, *, eps, features):
    # x_ref:     (ROW_TILE, F_pad)   alpha_ref/bias_ref: (1, F_pad)
    # `features` is the TRUE (unpadded) feature count; pad lanes are zero and
    # contribute nothing to sum / sum-of-squares.
    x = x_ref[...].astype(jnp.float32)

    n = jnp.float32(features)
    s1 = jnp.sum(x, axis=-1, keepdims=True)
    s2 = jnp.sum(x * x, axis=-1, keepdims=True)
    mean = s1 * (jnp.float32(1.0) / n)

    # torch.std default is unbiased (Bessel correction: divide by N-1).
    # Single-pass variance; clamp at 0 to guard fp32 cancellation.
    var = (s2 - n * mean * mean) * (jnp.float32(1.0) / (n - jnp.float32(1.0)))
    var = jnp.maximum(var, jnp.float32(0.0))
    std = jnp.sqrt(var)

    denom = std + jnp.float32(eps)
    # EUP approximate reciprocal (separate VLIW slot, ~free) + one
    # Newton-Raphson step on the per-row (ROW_TILE, 1) column.
    inv = pl.reciprocal(denom, approx=True)
    inv = inv * (jnp.float32(2.0) - denom * inv)

    alpha = alpha_ref[...].astype(jnp.float32)
    bias = bias_ref[...].astype(jnp.float32)

    # Output formed directly; elementwise chain fuses into one pass over the
    # tile (no persistent diff buffer).
    o_ref[...] = ((x - mean) * (alpha * inv) + bias).astype(o_ref.dtype)


def _vmem_budgets():
    """(tile_budget_bytes, vmem_limit_bytes), generation-aware."""
    cap = None
    try:
        info = pltpu.get_tpu_info()
        cap = getattr(info, "vmem_capacity_bytes", None)
    except Exception:
        cap = None
    if cap is not None and cap >= (100 << 20):
        # v5e / v6e: 128 MiB physical VMEM per TensorCore.
        return 40 << 20, 96 << 20
    # v7x (64 MiB per TC) or unknown: stay conservative, never ask for the
    # full physical VMEM.
    return 12 << 20, 48 << 20


def _choose_row_tile(rows, feat_padded, itemsize, pack, tile_budget_bytes,
                     tile_bytes_target=4 << 20):
    """Byte-based row-tile selection with VMEM accounting and >=2-step grid."""
    # Per-row VMEM: 2x double-buffered input + 2x double-buffered output tiles
    # plus ~2 full-tile fp32 intermediates the compiler keeps live (upcast x,
    # fused elementwise temp).
    per_row_vmem = feat_padded * (2 * itemsize + 2 * itemsize + 2 * 4)
    max_rows_vmem = max(pack, tile_budget_bytes // per_row_vmem)

    # Target ~tile_bytes_target of streamed input per grid step.
    target_rows = max(pack, tile_bytes_target // (feat_padded * itemsize))

    rt = min(int(target_rows), int(max_rows_vmem))
    rt = max(pack, (rt // pack) * pack)

    rows_min_padded = -(-rows // pack) * pack
    # Guarantee >= 4 grid steps when the row count allows (>= 2 minimum) so
    # double buffering and v7x dual-TC sharding both kick in.
    quarter = -(-(rows_min_padded // 4) // pack) * pack
    rt = min(rt, max(pack, quarter), rows_min_padded)
    rt = max(pack, rt)
    return rt


def layer_norm_pallas(x, alpha, bias, eps=1e-6):
    """x: [B, S, F]; alpha, bias: [F].  Returns [B, S, F]."""
    B, S, F = x.shape
    if F < 2:
        raise ValueError("LayerNormalization needs features >= 2 "
                         "(unbiased std divides by features - 1).")
    rows = B * S
    itemsize = jnp.dtype(x.dtype).itemsize

    # Sublane packing: 8 rows per vreg for 32-bit, 16 for bf16, 32 for 8-bit.
    pack = 8 * max(1, 4 // itemsize)

    # Feature axis padded to a lane-dense multiple of 128 (pad lanes are zero
    # and excluded from the statistics via the true-F divisor in the kernel).
    Fp = -(-F // 128) * 128

    tile_budget_bytes, vmem_limit_bytes = _vmem_budgets()
    rt = _choose_row_tile(rows, Fp, itemsize, pack, tile_budget_bytes)
    rows_padded = -(-rows // rt) * rt

    x2d = x.reshape(rows, F)
    if rows_padded != rows or Fp != F:
        x2d = jnp.pad(x2d, ((0, rows_padded - rows), (0, Fp - F)))
    alpha2d = alpha.reshape(1, F)
    bias2d = bias.reshape(1, F)
    if Fp != F:
        alpha2d = jnp.pad(alpha2d, ((0, 0), (0, Fp - F)))
        bias2d = jnp.pad(bias2d, ((0, 0), (0, Fp - F)))

    kernel = functools.partial(_layernorm_kernel, eps=float(eps), features=F)

    # TODO(synk): for very small tiles (< ~1 MiB) pipeline_mode=pl.Buffered(3)
    # on the x input could hide DMA issue latency; left at the default depth-2
    # since byte-sized tiles are already multi-MiB for realistic shapes.
    out2d = pl.pallas_call(
        kernel,
        out_shape=jax.ShapeDtypeStruct((rows_padded, Fp), x.dtype),
        grid_spec=pltpu.PrefetchScalarGridSpec(
            num_scalar_prefetch=0,
            grid=(rows_padded // rt,),
            in_specs=[
                pl.BlockSpec((rt, Fp), lambda i: (i, 0)),
                pl.BlockSpec((1, Fp), lambda i: (0, 0)),
                pl.BlockSpec((1, Fp), lambda i: (0, 0)),
            ],
            out_specs=pl.BlockSpec((rt, Fp), lambda i: (i, 0)),
        ),
        compiler_params=pltpu.CompilerParams(
            dimension_semantics=("parallel",),   # v7x shards rows on 2 TCs
            vmem_limit_bytes=vmem_limit_bytes,
        ),
    )(x2d, alpha2d, bias2d)

    if rows_padded != rows or Fp != F:
        out2d = out2d[:rows, :F]
    return out2d.reshape(B, S, F)


def decoder_forward(x, encoder_output, src_mask, tgt_mask, layers, alpha, bias,
                    eps=1e-6):
    """Mirrors Decoder.forward: run each supplied layer, then LayerNormalization."""
    # TODO(synk): the decoder layers in nn.ModuleList are externally defined and
    # not part of this module; they are applied here as plain-JAX callables.
    for layer in layers:
        x = layer(x, encoder_output, src_mask, tgt_mask)
    return layer_norm_pallas(x, alpha, bias, eps=eps)


def _ref_layernorm(x, alpha, bias, eps=1e-6):
    # Two-pass reference (exactly the PyTorch formula, unbiased std).
    F = x.shape[-1]
    mean = x.mean(-1, keepdims=True)
    std = jnp.sqrt(((x - mean) ** 2).sum(-1, keepdims=True) / (F - 1))
    return alpha * (x - mean) / (std + eps) + bias


if __name__ == "__main__":
    B, S, F = 2, 8, 128  # batch, seq, features (features normalized over)

    key = jax.random.PRNGKey(0)
    kx, ke, kp = jax.random.split(key, 3)
    x = jax.random.normal(kx, (B, S, F), dtype=jnp.float32)
    encoder_output = jax.random.normal(ke, (B, S, F), dtype=jnp.float32)
    src_mask = jnp.ones((B, 1, 1, S), dtype=jnp.float32)
    tgt_mask = jnp.tril(jnp.ones((S, S), dtype=jnp.float32))[None, None]

    # LayerNormalization parameters, initialized exactly as in __init__.
    alpha = jnp.ones((F,), dtype=jnp.float32)
    bias = jnp.zeros((F,), dtype=jnp.float32)

    # No layer internals are specified by the module; use an empty layer list
    # (equivalent to nn.ModuleList([])).
    layers = []

    out = decoder_forward(x, encoder_output, src_mask, tgt_mask, layers,
                          alpha, bias)
    out = jax.block_until_ready(out)

    ref = _ref_layernorm(x, alpha, bias)
    assert out.shape == (B, S, F)
    assert jnp.allclose(out, ref, atol=1e-4, rtol=1e-4)

    # Second check: non-tile-multiple row count, non-trivial params, and a
    # feature dim that is NOT a multiple of 128 -> exercises both the row-pad
    # and lane-pad paths plus the single-pass statistics vs two-pass reference.
    B2, S2, F2 = 2, 7, 200
    k1, k2, k3 = jax.random.split(kp, 3)
    x2 = jax.random.normal(k1, (B2, S2, F2), dtype=jnp.float32)
    alpha2 = 1.0 + 0.1 * jax.random.normal(k2, (F2,), dtype=jnp.float32)
    bias2 = 0.1 * jax.random.normal(k3, (F2,), dtype=jnp.float32)
    out2 = jax.block_until_ready(layer_norm_pallas(x2, alpha2, bias2))
    ref2 = _ref_layernorm(x2, alpha2, bias2)
    assert out2.shape == (B2, S2, F2)
    assert jnp.allclose(out2, ref2, atol=1e-4, rtol=1e-4)

    print("KERNEL_OK")
</pallas_src>

<mosaic_0001>
module attributes {stable_mosaic.version = 11 : i64} {
  func.func @_layernorm_kernel(%arg0: i32, %arg1: memref<8x128xf32, #tpu.memory_space<vmem>>, %arg2: memref<1x128xf32, #tpu.memory_space<vmem>>, %arg3: memref<1x128xf32, #tpu.memory_space<vmem>>, %arg4: memref<8x128xf32, #tpu.memory_space<vmem>>) attributes {dimension_semantics = [#tpu.dimension_semantics<parallel>], iteration_bounds = array<i64: 2>, scalar_prefetch = 0 : i64, scratch_operands = 0 : i64, tpu.core_type = #tpu.core_type<tc>, window_params = [{transform_indices = @transform_0, window_bounds = array<i64: 8, 128>}, {pipeline_mode = #tpu.pipeline_mode<synchronous>, transform_indices = @transform_1, window_bounds = array<i64: 1, 128>}, {pipeline_mode = #tpu.pipeline_mode<synchronous>, transform_indices = @transform_2, window_bounds = array<i64: 1, 128>}, {transform_indices = @transform_3, window_bounds = array<i64: 8, 128>}]} {
    %c0 = arith.constant 0 : index
    %c0_0 = arith.constant 0 : index
    %0 = vector.load %arg1[%c0, %c0_0] : memref<8x128xf32, #tpu.memory_space<vmem>>, vector<8x128xf32>
    %cst = arith.constant dense<0.000000e+00> : vector<8xf32>
    %1 = vector.multi_reduction <add>, %0, %cst [1] : vector<8x128xf32> to vector<8xf32>
    %2 = vector.shape_cast %1 : vector<8xf32> to vector<8x1xf32>
    %3 = arith.mulf %0, %0 : vector<8x128xf32>
    %cst_1 = arith.constant dense<0.000000e+00> : vector<8xf32>
    %4 = vector.multi_reduction <add>, %3, %cst_1 [1] : vector<8x128xf32> to vector<8xf32>
    %5 = vector.shape_cast %4 : vector<8xf32> to vector<8x1xf32>
    %cst_2 = arith.constant 1.000000e+00 : f32
    %cst_3 = arith.constant 1.280000e+02 : f32
    %6 = arith.divf %cst_2, %cst_3 : f32
    %7 = vector.broadcast %6 : f32 to vector<8x1xf32>
    %8 = arith.mulf %2, %7 : vector<8x1xf32>
    %cst_4 = arith.constant 1.280000e+02 : f32
    %9 = vector.broadcast %cst_4 : f32 to vector<8x1xf32>
    %10 = arith.mulf %9, %8 : vector<8x1xf32>
    %11 = arith.mulf %10, %8 : vector<8x1xf32>
    %12 = arith.subf %5, %11 : vector<8x1xf32>
    %cst_5 = arith.constant 1.280000e+02 : f32
    %cst_6 = arith.constant 1.000000e+00 : f32
    %13 = arith.subf %cst_5, %cst_6 : f32
    %cst_7 = arith.constant 1.000000e+00 : f32
    %14 = arith.divf %cst_7, %13 : f32
    %15 = vector.broadcast %14 : f32 to vector<8x1xf32>
    %16 = arith.mulf %12, %15 : vector<8x1xf32>
    %cst_8 = arith.constant 0.000000e+00 : f32
    %17 = vector.broadcast %cst_8 : f32 to vector<8x1xf32>
    %18 = arith.maximumf %16, %17 : vector<8x1xf32>
    %19 = math.sqrt %18 : vector<8x1xf32>
    %cst_9 = arith.constant 9.99999997E-7 : f32
    %20 = vector.broadcast %cst_9 : f32 to vector<8x1xf32>
    %21 = arith.addf %19, %20 : vector<8x1xf32>
    %22 = tpu.reciprocal %21 {approx = true} : vector<8x1xf32> -> vector<8x1xf32>
    %23 = arith.mulf %21, %22 : vector<8x1xf32>
    %cst_10 = arith.constant 2.000000e+00 : f32
    %24 = vector.broadcast %cst_10 : f32 to vector<8x1xf32>
    %25 = arith.subf %24, %23 : vector<8x1xf32>
    %26 = arith.mulf %22, %25 : vector<8x1xf32>
    %c0_11 = arith.constant 0 : index
    %c0_12 = arith.constant 0 : index
    %27 = vector.load %arg2[%c0_11, %c0_12] : memref<1x128xf32, #tpu.memory_space<vmem>>, vector<1x128xf32>
    %c0_13 = arith.constant 0 : index
    %c0_14 = arith.constant 0 : index
    %28 = vector.load %arg3[%c0_13, %c0_14] : memref<1x128xf32, #tpu.memory_space<vmem>>, vector<1x128xf32>
    %29 = vector.broadcast %8 : vector<8x1xf32> to vector<8x128xf32>
    %30 = arith.subf %0, %29 : vector<8x128xf32>
    %31 = vector.broadcast %27 : vector<1x128xf32> to vector<8x128xf32>
    %32 = vector.broadcast %26 : vector<8x1xf32> to vector<8x128xf32>
    %33 = arith.mulf %31, %32 : vector<8x128xf32>
    %34 = arith.mulf %30, %33 : vector<8x128xf32>
    %35 = vector.broadcast %28 : vector<1x128xf32> to vector<8x128xf32>
    %36 = arith.addf %34, %35 : vector<8x128xf32>
    %c0_15 = arith.constant 0 : index
    %c0_16 = arith.constant 0 : index
    %37 = vector.load %arg4[%c0_15, %c0_16] : memref<8x128xf32, #tpu.memory_space<vmem>>, vector<8x128xf32>
    tpu.vector_store %arg4[%c0_15, %c0_16], %36 {strides = array<i32>} : memref<8x128xf32, #tpu.memory_space<vmem>>, vector<8x128xf32>,
    return
  }
  func.func @transform_0(%arg0: i32) -> (i32, i32) {
    %c0_i32 = arith.constant 0 : i32
    %c0_i32_0 = arith.constant 0 : i32
    return %arg0, %c0_i32 : i32, i32
  }
  func.func @transform_1(%arg0: i32) -> (i32, i32) {
    %c0_i32 = arith.constant 0 : i32
    %c0_i32_0 = arith.constant 0 : i32
    %c0_i32_1 = arith.constant 0 : i32
    return %c0_i32, %c0_i32_0 : i32, i32
  }
  func.func @transform_2(%arg0: i32) -> (i32, i32) {
    %c0_i32 = arith.constant 0 : i32
    %c0_i32_0 = arith.constant 0 : i32
    %c0_i32_1 = arith.constant 0 : i32
    return %c0_i32, %c0_i32_0 : i32, i32
  }
  func.func @transform_3(%arg0: i32) -> (i32, i32) {
    %c0_i32 = arith.constant 0 : i32
    %c0_i32_0 = arith.constant 0 : i32
    return %arg0, %c0_i32 : i32, i32
  }
}

</mosaic_0001>

<bundles_post_ra>
// kernel: tpu_custom_call.1
= control target key start
LH: loop header
LB: loop body
LE: loop exit
PB: predicated region body
PF: predicated region fallthrough
CT: control target
= control target key end

     0   :  { %8 = vsyncpa [#allocation3], 0  ;;  %s716_s0 = inlined_call_operand.hbm [shape: f32[16,128], index: 0, kind: input, shape index: {}]   ;;  %s717_s1 = inlined_call_operand.hbm [shape: f32[1,128], index: 1, kind: input, shape index: {}]   ;;  %s718_s2 = inlined_call_operand.vmem [shape: f32[1,128], index: 2, kind: input, shape index: {}]   ;;  %s719_s3 = inlined_call_operand.hbm [shape: f32[16,128], index: 3, kind: output, shape index: {}]  }
   0x1   :  { %10 = vsyncpa [#allocation3 + $0x1], 0 }
   0x2   :  { %11 = vsyncpa [#allocation6], 0 }
   0x3   :  { %12 = vsyncpa [#allocation4], 0 }
   0x4   :  { %14 = vsyncpa [#allocation4 + $0x1], 0  ;;  %s571_s12 = smov 0   ;;  %s573_s13 = smov 0  }
   0x5   :  { %s575_s14 = smov 0   ;;  %s577_s15 = smov 0  }
   0x6 LB: > { %s592_s16 = sadd.s32 4294967295, %s548_s15   ;;  %s341_s17 = sadd.s32 4294967294, %s548_s15   ;;  %s548_s15 = sphi %s577_s15, %s729_s15   ;;  %s544_s14 = sphi %s575_s14, %s728_s14   ;;  %s540_s13 = sphi %s573_s13, %s727_s13   ;;  %s536_s12 = sphi %s571_s12, %s726_s12  }
   0x7   : > { %p40_p0 = scmp.ne.s32.totalorder %s540_s13, %s536_s12  ;;  %p41_p1 = scmp.eq.s32.totalorder %s592_s16, 0 }
   0x8   : > { %p106_p2 = scmp.eq.s32.totalorder %s592_s16, 1  ;;  %p112_p3 = scmp.eq.s32.totalorder %s341_s17, 1 }
   0x9   : > { %p601_p4 = por %p41_p1, %p40_p0  ;;  %p342_p5 = scmp.ge.s32.totalorder %s548_s15, 1 }
   0xa   : > { %p606_p6 = por %p112_p3, %p40_p0  ;;  %p119_p7 = scmp.lt.s32.totalorder %s548_s15, 3 }
   0xb   : > { %s131_s22 = sshll.u32 %s717_s1, 4  ;;  %s550_s24 = smov [#allocation5]   ;;  %s132_s22 = int_to_ptr.hbm [resolvable:$true] %s131_s22 }
   0xc   : > { %p614_p8 = pnand %p342_p5, %p119_p7  ;;  %s133_s25 = sshll.u32 %s550_s24, 4  ;;  %s134_s25 = int_to_ptr.vmem [resolvable:$true] %s133_s25 }
   0xd   : > { %s624_s26 = sadd.s32 1, %s548_s15   ;;  %s27_s27 = sadd.s32 1, %s544_s14 }
   0xe   : > { %p363_p10 = pneg %p614_p8  ;;  %s24_s28 = ssub.s32 %s548_s15, %s624_s26 }
   0xf   : > { %p25_p12 = scmp.eq.s32.totalorder %s24_s28, 0  ;;  %p34_p13 = scmp.ne.s32.totalorder %s544_s14, %s540_s13 }
  0x10   : > { %p364_p11 = pnand %p363_p10, %p41_p1  ;;  %p35_p0 = scmp.eq.s32.totalorder %s548_s15, 0 }
  0x11   : > { %s633_s29 = scalar_select %p25_p12, %s544_s14, %s27_s27  }
  0x12   : > { %366 = dma.hbm_to_vmem [thread:$0]  (!%p364_p11), %s132_s22, 16, %s134_s25, [#allocation6]  }
  0x13   : > { %p637_p3 = por %p106_p2, %p34_p13  ;;  %p376_p5 = scmp.lt.s32.totalorder %s548_s15, 2 }
  0x14   : > { %s147_s4 = sand.u32 1, %s544_s14   ;;  %s346_s5 = sshll.u32 %s548_s15, 3 }
  0x15   : > { %p36_p7 = por %p35_p0, %p34_p13  ;;  %s345_s6 = sshll.u32 %s147_s4, 3 }
  0x16   : > { %s155_s9 = scalar_lea.hbm %s716_s0, %s346_s5  ;;  %s151_s11 = scalar_lea.vmem [#allocation2], %s345_s6 }
  0x17   : > { %s157_s10 = sshll.u32 %s155_s9, 4  ;;  %s159_s17 = sshll.u32 %s151_s11, 4  ;;  %s158_s10 = int_to_ptr.hbm [resolvable:$true] %s157_s10  ;;  %s160_s17 = int_to_ptr.vmem [resolvable:$true] %s159_s17 }
  0x18   : > { %p647_p10 = pnand %p376_p5, %p36_p7  ;;  %s148_s21 = scalar_lea.sflag [#allocation3], %s147_s4 }
  0x19   : > { %s448_s22 = sshra.s32 %s158_s10, 4  ;;  %s455_s28 = scalar_lea.hbm %s716_s0, 16  ;;  %s449_s22 = int_to_ptr.hbm [resolvable:$true] %s448_s22 }
  0x1a   : > { %s450_s24 = scalar_lea.hbm %s449_s22, 8  ;;  %p452_p11 = pneg %p647_p10 }
  0x1b   : > { %p451_p2 = scmp.ne.s32.totalorder %s449_s22, %s450_s24  ;;  %p456_p0 = scmp.lt.s32.totalorder %s449_s22, %s716_s0 }
  0x1c   : > { %p457_p5 = scmp.lt.s32.totalorder %s455_s28, %s450_s24 }
  0x1d   : > { %p453_p12 = pnand %p452_p11, %p451_p2 }
  0x1e   : > { %p458_p7 = por %p457_p5, %p456_p0 }
  0x1f   : > { %p454_p13 = pneg %p453_p12 }
  0x21   : > { %p459_p9 = pnand %p458_p7, %p454_p13 }
  0x23   : > { %462 = shalt.err (!%p459_p9)
}
  0x24   : > { %370 = dma.hbm_to_vmem [thread:$0]  (!%p647_p10), %s158_s10, 128, %s160_s17, %s148_s21  }
  0x25   : > { %168 = sbr.rel (%p614_p8) target bundleno = 221 (0xdd), region = 32  ;;  %s664_s4 = sand.u32 (!%p614_p8), 1, %s540_s13  }
  0x26   : > { %s348_s7 = sshll.u32 (!%p614_p8), %s664_s4, 3  ;;  %s171_s8 = scalar_lea.sflag (!%p614_p8), [#allocation3], %s664_s4 }
  0x27   : > { %s174_s9 = scalar_lea.vmem (!%p614_p8), [#allocation2], %s348_s7 }
  0x2a   : > { %523 = dma.done.wait (%p601_p4), %s171_s8, 128  }
  0x2b   : > { %525 = vsyncadd (%p601_p4), %s171_s8, 4294967168 }
  0x2c   : > { %527 = dma.done.wait (%p41_p1), [#allocation6], 16  }
  0x2d   : > { %529 = vsyncadd (%p41_p1), [#allocation6], 4294967280  ;;  %v203_v0 = vld [vmem:[%s174_s9] sm:$0xff]  ;;  %s352_s18 = sshll.u32 %s592_s16, 3  ;;  %v412_v24 = vld [vmem:[#allocation5] ss:$0 sm:$0xff] }
  0x2e   : > { %204 = vadd.xlane.f32.xlu0 %v203_v0  ;;  %v206_v1 = vmul.f32 %v203_v0, %v203_v0  ;;  %s256_s11 = scalar_lea.hbm %s719_s3, %s352_s18  ;;  %v413_v28 = vld [vmem:[%s718_s2] ss:$0 sm:$0xff]  ;;  %s202_s21 = scalar_lea.vmem [#allocation7], %s348_s7 }
  0x2f   : > { %s258_s22 = sshll.u32 %s202_s21, 4  ;;  %s260_s24 = sshll.u32 %s256_s11, 4  ;;  %s259_s22 = int_to_ptr.vmem [resolvable:$true] %s258_s22  ;;  %s261_s24 = int_to_ptr.hbm [resolvable:$true] %s260_s24 }
  0x30   : > { %s246_s16 = scalar_lea.sflag [#allocation4], %s664_s4  ;;  %s492_s25 = sshra.s32 %s261_s24, 4  ;;  %s493_s25 = int_to_ptr.hbm [resolvable:$true] %s492_s25 }
  0x31   : > { %s494_s27 = scalar_lea.hbm %s493_s25, 8  ;;  %s498_s6 = scalar_lea.hbm %s719_s3, 16 }
  0x32   : > { %p495_p1 = scmp.ne.s32.totalorder %s493_s25, %s494_s27  ;;  %p499_p9 = scmp.lt.s32.totalorder %s493_s25, %s719_s3 }
  0x33   : > { %p500_p10 = scmp.lt.s32.totalorder %s498_s6, %s494_s27 }
  0x34   : > { %p496_p4 = pnand %p495_p1, %p637_p3 }
  0x35   : > { %p501_p2 = por %p500_p10, %p499_p9 }
  0x36   : > { %207 = vadd.xlane.f32.xlu0 %v206_v1  ;;  %p497_p8 = pneg %p496_p4 }
  0x38   : > { %p502_p11 = pnand %p501_p2, %p497_p8 }
  0xa1   : > { %v205_v2 = vpop.xlane.xlu0 %204 }
  0xa2   : > { %v209_v3 = vmul.f32 0.0078125, %v205_v2 }
  0xa4   : > { %v210_v4 = vmul.f32 128.0, %v209_v3  ;;  %v234_v26 = vsub.f32 %v203_v0, %v209_v3 }
  0xa6   : > { %v211_v5 = vmul.f32 %v210_v4, %v209_v3 }
  0xa9   : > { %v208_v6 = vpop.xlane.xlu0 %207 }
  0xaa   : > { %v212_v7 = vsub.f32 %v208_v6, %v211_v5 }
  0xac   : > { %v213_v8 = vmul.f32 0.007874016, %v212_v7 }
  0xae   : > { %v214_v9 = vmax.f32 %v213_v8, 0.0 }
  0xb0   : > { %414 = vrsqrt.f32 %v214_v9  ;;  %vm222_vm0 = vcmp.eq.f32.partialorder %v214_v9, inf  ;;  %v225_v17 = vand.u32 2147483648, %v214_v9  ;;  %vm224_vm1 = vcmp.eq.f32.partialorder %v214_v9, 0.0 }
  0xb6   : > { %v415_v10 = vpop.eup %414 }
  0xb7   : > { %v216_v11 = vmul.f32 %v415_v10, %v214_v9 }
  0xb9   : > { %v217_v12 = vmul.f32 %v415_v10, %v216_v11 }
  0xbb   : > { %v218_v13 = vmul.f32 0.5, %v217_v12 }
  0xbd   : > { %v219_v14 = vsub.f32 1.5, %v218_v13 }
  0xbf   : > { %v220_v15 = vmul.f32 %v415_v10, %v219_v14 }
  0xc1   : > { %v221_v16 = vmul.f32 %v220_v15, %v214_v9 }
  0xc3   : > { %v223_v18 = vsel %vm222_vm0, %v214_v9, %v221_v16 }
  0xc4   : > { %v226_v19 = vsel %vm224_vm1, %v225_v17, %v223_v18 }
  0xc5   : > { %v227_v20 = vadd.f32 1e-06, %v226_v19 }
  0xc7   : > { %416 = vrcp.f32 %v227_v20 }
  0xcd   : > { %v417_v21 = vpop.eup %416 }
  0xce   : > { %v229_v22 = vmul.f32 %v417_v21, %v227_v20 }
  0xd0   : > { %v230_v23 = vsub.f32 2.0, %v229_v22 }
  0xd2   : > { %v231_v25 = vmul.f32 %v417_v21, %v230_v23 }
  0xd4   : > { %v238_v27 = vmul.f32 %v412_v24, %v231_v25 }
  0xd6   : > { %v239_v29 = vmul.f32 %v238_v27, %v234_v26 }
  0xd8   : > { %v243_v30 = vadd.f32 %v413_v28, %v239_v29 }
  0xda   : > { %244 = vst [vmem:[%s202_s21] sm:$0xff] %v243_v30 }
  0xdb   : > { %505 = shalt.err (!%p502_p11)
}
  0xdc   : > { %361 = dma.vmem_to_hbm [thread:$0]  (%p637_p3), %s259_s22, 128, %s261_s24, %s246_s16  }
  0xdd PF: > { %s272_s4 = sand.u32 1, %s536_s12   ;;  %p725_p12 = scmp.ge.s32.totalorder %s548_s15, 2 }
  0xde   : > { %s273_s9 = scalar_lea.sflag [#allocation4], %s272_s4 }
  0xdf   : > { %p372_p13 = pnand %p725_p12, %p606_p6 }
  0xe1   : > { %p373_p0 = pneg %p372_p13 }
  0xe3   : > { %531 = dma.done.wait (%p373_p0), %s273_s9, 128  }
  0xe4   : > { %533 = vsyncadd (%p373_p0), %s273_s9, 4294967168  ;;  %p17_p5 = scmp.ge.s32.totalorder %s624_s26, 4   ;;  %s726_s12 = smov %s540_s13 }
  0xe5   : > { %s727_s13 = smov %s544_s14  ;;  %s728_s14 = smov %s633_s29 }
  0xe6   : > { %s729_s15 = smov %s624_s26  ;;  %19 = sbr.rel (!%p17_p5) target bundleno = 6 (0x6), region = 81 }
  0xeb   :  { %279 = vsyncpa [#allocation3], 1 }
  0xec   :  { %281 = vsyncpa [#allocation3 + $0x1], 1 }
  0xed   :  { %282 = vsyncpa [#allocation6], 1 }
  0xee   :  { %283 = vsyncpa [#allocation4], 1 }
  0xef   :  { %285 = vsyncpa [#allocation4 + $0x1], 1 }

</bundles_post_ra>
